<compile_context>
chip_gen: v5e
topology: v5e:2x2
jax: 0.10.0
libtpu: 0.0.40
codegen_flags: <defaults>
</compile_context>

<pallas_src>
import functools
import math

import jax
import jax.numpy as jnp
from jax.experimental import pallas as pl
from jax.experimental.pallas import tpu as pltpu


_IDENTITY_DIVS = ("KLD", "CHI")
_KERNEL_DIVS = ("RKL", "SQH", "JSD", "GAN")
_LANE = 128
_COL_CANDIDATES = (16384, 8192, 4096, 2048, 1024, 512, 256, 128)
_LOG2 = math.log(2.0)


# ------------------------------------------------------------------------------
# Kernel
# ------------------------------------------------------------------------------
def _activation_kernel(v_ref, o_ref, *, divergence: str, compute_dtype):
    v = v_ref[...]
    if v.dtype != compute_dtype:
        v = v.astype(compute_dtype)
    one = jnp.asarray(1.0, compute_dtype)

    if divergence == "RKL":
        out = -jnp.exp(-v)
    elif divergence == "SQH":
        out = one - jnp.exp(-v)
    elif divergence == "JSD":
        # Matches the PyTorch reference formula exactly (including overflow to
        # -inf for very negative v); a stable -softplus(-v) form would change
        # extreme-value semantics.
        out = jnp.asarray(_LOG2, compute_dtype) - jnp.log(one + jnp.exp(-v))
    elif divergence == "GAN":
        out = -jnp.log(one + jnp.exp(-v))
    else:
        raise ValueError(f"unexpected divergence in kernel: {divergence}")

    o_ref[...] = out.astype(o_ref.dtype)


# ------------------------------------------------------------------------------
# Per-chip tuning
# ------------------------------------------------------------------------------
def _device_kind() -> str:
    try:
        return jax.devices()[0].device_kind.lower()
    except Exception:  # defensive: no devices / backend init failure
        return ""


@functools.lru_cache(maxsize=None)
def _chip_tuning():
    """Per-generation block-size / VMEM / compute-dtype tuning."""
    kind = _device_kind()
    if any(tag in kind for tag in ("v7", "tpu7", "7x")):
        # v7x: ~3.2 TB/s HBM -> big blocks to amortize the ~0.35us/step overhead.
        # 6 MiB in + 6 MiB out, double-buffered = 24 MiB < 32 MiB limit.
        return {"block_bytes": 6 << 20, "vmem_limit": 32 << 20,
                "two_cores": True, "bf16_native": True}
    if "v6" in kind:
        # v6e: 4 MiB in + 4 MiB out, double-buffered = 16 MiB < 32 MiB limit.
        return {"block_bytes": 4 << 20, "vmem_limit": 32 << 20,
                "two_cores": False, "bf16_native": True}
    # v5e (16 MiB scoped-VMEM default, no bf16 VPU/EUP) and unknown chips:
    # 2 MiB in + 2 MiB out, double-buffered = 8 MiB, well under the default.
    return {"block_bytes": 2 << 20, "vmem_limit": None,
            "two_cores": False, "bf16_native": False}


# ------------------------------------------------------------------------------
# Block sizing
# ------------------------------------------------------------------------------
def _choose_block_rows(rows, cols, itemsize, block_bytes, sub, two_cores):
    """Pick block_rows: ~block_bytes of input per step, packed-sublane aligned,
    preferring an exact divisor of rows and an even step count (v7x megacore)."""
    target_rows = max(sub, (block_bytes // itemsize) // cols)
    want_split = two_cores and rows >= 2 * sub
    if rows <= target_rows and not want_split:
        return rows                              # one full-dim block
    block_rows = min(rows, target_rows)
    if want_split:
        block_rows = min(block_rows, -(-rows // 2))   # ceil(rows / 2)
    block_rows = max(sub, (block_rows // sub) * sub)
    # Search downward (within ~2x of target) for an exact divisor of rows so
    # every step is a full, unmasked block; prefer even (or single) step counts
    # so the two v7x TensorCores get equal work.
    lo = max(sub, ((block_rows // 2) // sub) * sub)
    divisor = None
    for br in range(block_rows, lo - 1, -sub):
        if rows % br:
            continue
        steps = rows // br
        if not two_cores or steps == 1 or steps % 2 == 0:
            return br
        if divisor is None:
            divisor = br
    return divisor if divisor is not None else block_rows


# ------------------------------------------------------------------------------
# Launch helper (flat, 128-divisible chunk)
# ------------------------------------------------------------------------------
def _launch(flat_main, divergence, compute_dtype, tuning):
    n = flat_main.size
    dtype = flat_main.dtype
    itemsize = dtype.itemsize

    # Lane-dense layout: widest last dim (multiple of 128) dividing n.
    cols = _LANE
    for c in _COL_CANDIDATES:
        if n % c == 0:
            cols = c
            break
    rows = n // cols
    x2d = flat_main.reshape(rows, cols)

    sub = 8 * max(1, 4 // itemsize)              # packed-sublane multiple 8/16/32
    block_rows = _choose_block_rows(rows, cols, itemsize, tuning["block_bytes"],
                                    sub, tuning["two_cores"])
    grid = (pl.cdiv(rows, block_rows),)

    kernel = functools.partial(_activation_kernel, divergence=divergence,
                               compute_dtype=compute_dtype)
    n_trans = 2 if divergence in ("JSD", "GAN") else 1

    # TODO(synk): if this op runs inside a larger jitted model, consider
    # allow_input_fusion (or dropping the pallas_call entirely) so XLA can fuse
    # the activation into its producer and avoid the extra HBM round trip.
    out2d = pl.pallas_call(
        kernel,
        out_shape=jax.ShapeDtypeStruct((rows, cols), dtype),
        grid=grid,
        in_specs=[pl.BlockSpec((block_rows, cols), lambda i: (i, 0))],
        out_specs=pl.BlockSpec((block_rows, cols), lambda i: (i, 0)),
        compiler_params=pltpu.CompilerParams(
            dimension_semantics=("parallel",),
            vmem_limit_bytes=tuning["vmem_limit"],
        ),
        cost_estimate=pl.CostEstimate(
            flops=3 * n,
            transcendentals=n_trans * n,
            bytes_accessed=2 * n * itemsize,
        ),
    )(x2d)
    return out2d.reshape(-1)


# ------------------------------------------------------------------------------
# Pure-JAX math (used for the tiny ragged tail and for test references)
# ------------------------------------------------------------------------------
def _pointwise_ref(v, divergence):
    if divergence in _IDENTITY_DIVS:
        return v
    if divergence == "RKL":
        return -jnp.exp(-v)
    if divergence == "SQH":
        return 1.0 - jnp.exp(-v)
    if divergence == "JSD":
        return jnp.log(2.0) - jnp.log(1.0 + jnp.exp(-v))
    if divergence == "GAN":
        return -jnp.log(1.0 + jnp.exp(-v))
    raise ValueError(divergence)


# ------------------------------------------------------------------------------
# Public wrapper (matches Activation_f.forward)
# ------------------------------------------------------------------------------
def activation_f(v: jax.Array, divergence: str = "GAN") -> jax.Array:
    """Elementwise f-divergence activation, computed in a Pallas TPU kernel."""
    if divergence in _IDENTITY_DIVS:
        # Identity divergences: skip the HBM read+write round trip entirely.
        return v
    if divergence not in _KERNEL_DIVS:
        raise ValueError(f"unknown divergence: {divergence}")

    orig_shape = v.shape
    orig_dtype = v.dtype
    total = v.size
    if total == 0:
        return v

    tuning = _chip_tuning()
    if orig_dtype == jnp.bfloat16 and tuning["bf16_native"]:
        compute_dtype = jnp.bfloat16         # native bf16 VPU/EUP on v6e/v7x
    else:
        compute_dtype = jnp.float32

    flat = v.reshape(-1)
    main = total - (total % _LANE)

    pieces = []
    if main:
        pieces.append(_launch(flat[:main], divergence, compute_dtype, tuning))
    if main != total:
        # Ragged tail (< 128 elements): plain JAX instead of a whole-tensor
        # pad/slice round trip (which would ~3x the HBM traffic).
        tail = flat[main:].astype(compute_dtype)
        pieces.append(_pointwise_ref(tail, divergence).astype(orig_dtype))

    out = pieces[0] if len(pieces) == 1 else jnp.concatenate(pieces)
    return out.reshape(orig_shape)


# ------------------------------------------------------------------------------
# Self-test
# ------------------------------------------------------------------------------
if __name__ == "__main__":
    key = jax.random.PRNGKey(0)
    k1, k2, k3, k4 = jax.random.split(key, 4)
    test_cases = [
        # Small NCHW conv-style activation tensor (the spec's implied shape).
        jax.random.normal(k1, (2, 4, 16, 16), dtype=jnp.float32),
        # Mid-size tensor: exercises a multi-step grid / pipelining.
        jax.random.normal(k2, (8, 16, 128, 128), dtype=jnp.float32),
        # Ragged size (not a multiple of 128): exercises the prefix+tail path.
        jax.random.normal(k3, (3, 7, 11), dtype=jnp.float32),
        # bf16 input: exercises the native-bf16 compute path on v6e/v7x.
        jax.random.normal(k4, (2, 4, 16, 16), dtype=jnp.float32).astype(jnp.bfloat16),
    ]

    ok = True
    for x in test_cases:
        for div in ("GAN", "KLD", "RKL", "CHI", "SQH", "JSD"):
            y = jax.block_until_ready(activation_f(x, divergence=div))
            y_ref = _pointwise_ref(x.astype(jnp.float32), div)
            if x.dtype == jnp.bfloat16:
                atol, rtol = 5e-2, 5e-2
            else:
                atol, rtol = 1e-5, 1e-5
            good = (
                y.shape == x.shape
                and y.dtype == x.dtype
                and bool(jnp.allclose(y.astype(jnp.float32), y_ref,
                                      atol=atol, rtol=rtol))
            )
            if not good:
                ok = False
                print(f"MISMATCH divergence={div} shape={x.shape} dtype={x.dtype}")

    if ok:
        print("KERNEL_OK")
</pallas_src>

<mosaic_0001>
module attributes {stable_mosaic.version = 11 : i64} {
  func.func @_activation_kernel(%arg0: i32, %arg1: memref<1x2048xf32, #tpu.memory_space<vmem>>, %arg2: memref<1x2048xf32, #tpu.memory_space<vmem>>) attributes {dimension_semantics = [#tpu.dimension_semantics<parallel>], iteration_bounds = array<i64: 1>, scalar_prefetch = 0 : i64, scratch_operands = 0 : i64, tpu.core_type = #tpu.core_type<tc>, window_params = [{transform_indices = @transform_0, window_bounds = array<i64: 1, 2048>}, {transform_indices = @transform_1, window_bounds = array<i64: 1, 2048>}]} {
    %c0 = arith.constant 0 : index
    %c0_0 = arith.constant 0 : index
    %0 = vector.load %arg1[%c0, %c0_0] : memref<1x2048xf32, #tpu.memory_space<vmem>>, vector<1x2048xf32>
    %cst = arith.constant 0.000000e+00 : f32
    %1 = vector.broadcast %cst : f32 to vector<1x2048xf32>
    %2 = arith.subf %1, %0 : vector<1x2048xf32>
    %3 = math.exp %2 : vector<1x2048xf32>
    %cst_1 = arith.constant 1.000000e+00 : f32
    %4 = vector.broadcast %cst_1 : f32 to vector<1x2048xf32>
    %5 = arith.addf %4, %3 : vector<1x2048xf32>
    %6 = math.log %5 : vector<1x2048xf32>
    %cst_2 = arith.constant 0.000000e+00 : f32
    %7 = vector.broadcast %cst_2 : f32 to vector<1x2048xf32>
    %8 = arith.subf %7, %6 : vector<1x2048xf32>
    %c0_3 = arith.constant 0 : index
    %c0_4 = arith.constant 0 : index
    %9 = vector.load %arg2[%c0_3, %c0_4] : memref<1x2048xf32, #tpu.memory_space<vmem>>, vector<1x2048xf32>
    tpu.vector_store %arg2[%c0_3, %c0_4], %8 {strides = array<i32>} : memref<1x2048xf32, #tpu.memory_space<vmem>>, vector<1x2048xf32>,
    return
  }
  func.func @transform_0(%arg0: i32) -> (i32, i32) {
    %c0_i32 = arith.constant 0 : i32
    %c0_i32_0 = arith.constant 0 : i32
    return %arg0, %c0_i32 : i32, i32
  }
  func.func @transform_1(%arg0: i32) -> (i32, i32) {
    %c0_i32 = arith.constant 0 : i32
    %c0_i32_0 = arith.constant 0 : i32
    return %arg0, %c0_i32 : i32, i32
  }
}

</mosaic_0001>

<bundles_post_ra>
// kernel: tpu_custom_call.1
= control target key start
LH: loop header
LB: loop body
LE: loop exit
PB: predicated region body
PF: predicated region fallthrough
CT: control target
= control target key end

     0   :  { %6 = vsyncpa [#allocation3], 0  ;;  %s138_s0 = inlined_call_operand.hbm [shape: f32[1,2048], index: 0, kind: input, shape index: {}]   ;;  %s139_s1 = inlined_call_operand.hbm [shape: f32[1,2048], index: 1, kind: output, shape index: {}]  }
   0x1   :  { %7 = vsyncpa [#allocation4], 0  ;;  %s13_s8 = sshll.u32 %s138_s0, 4  ;;  %s120_s9 = smov [#allocation2]   ;;  %s14_s8 = int_to_ptr.hbm [resolvable:$true] %s13_s8 }
   0x2   :  { %s15_s10 = sshll.u32 %s120_s9, 4  ;;  %s16_s10 = int_to_ptr.vmem [resolvable:$true] %s15_s10 }
   0x3   :  { %18 = dma.hbm_to_vmem [thread:$0]  %s14_s8, 256, %s16_s10, [#allocation3]  }
   0x4   :  { %116 = dma.done.wait [#allocation3], 256  }
   0x5   :  { %117 = vsyncadd [#allocation3], 4294967040  ;;  %v23_v0 = vld [vmem:[#allocation2] sm:$0xff]  ;;  %v24_v1 = vld [vmem:[#allocation2 + $0x8] sm:$0xff]  ;;  %s121_s0 = smov [#allocation5]   ;;  %s48_s14 = sshll.u32 %s139_s1, 4  ;;  %s49_s14 = int_to_ptr.hbm [resolvable:$true] %s48_s14 }
   0x6   :  { %v25_v2 = vsub.f32 0.0, %v23_v0  ;;  %v26_v3 = vsub.f32 0.0, %v24_v1  ;;  %s46_s11 = sshll.u32 %s121_s0, 4  ;;  %s47_s11 = int_to_ptr.vmem [resolvable:$true] %s46_s11 }
   0x8   :  { %v27_v4 = vmul.f32 1.442695, %v25_v2  ;;  %v29_v5 = vmul.f32 1.442695, %v26_v3 }
   0xa   :  { %60 = vpow2.f32 %v27_v4 }
   0xb   :  { %62 = vpow2.f32 %v29_v5 }
  0x10   :  { %v61_v6 = vpop.eup %60 }
  0x11   :  { %v63_v7 = vpop.eup %62  ;;  %v31_v8 = vadd.f32 1.0, %v61_v6 }
  0x12   :  { %v32_v9 = vadd.f32 1.0, %v63_v7 }
  0x13   :  { %64 = vlog2.f32 %v31_v8 }
  0x14   :  { %66 = vlog2.f32 %v32_v9 }
  0x19   :  { %v65_v10 = vpop.eup %64 }
  0x1a   :  { %v67_v11 = vpop.eup %66  ;;  %v34_v12 = vmul.f32 0.6931472, %v65_v10 }
  0x1b   :  { %v36_v13 = vmul.f32 0.6931472, %v67_v11 }
  0x1c   :  { %v37_v14 = vsub.f32 0.0, %v34_v12 }
  0x1d   :  { %v38_v15 = vsub.f32 0.0, %v36_v13 }
  0x1e   :  { %39 = vst [vmem:[#allocation5] sm:$0xff] %v37_v14 }
  0x1f   :  { %40 = vst [vmem:[#allocation5 + $0x8] sm:$0xff] %v38_v15 }
  0x20   :  { %51 = dma.vmem_to_hbm [thread:$0]  %s47_s11, 256, %s49_s14, [#allocation4]  }
  0x21   :  { %118 = dma.done.wait [#allocation4], 256  }
  0x22   :  { %119 = vsyncadd [#allocation4], 4294967040 }
  0x23   :  { %56 = vsyncpa [#allocation3], 1 }
  0x24   :  { %57 = vsyncpa [#allocation4], 1 }

</bundles_post_ra>
